<compile_context>
chip_gen: v5e
topology: v5e:2x2
jax: 0.10.0
libtpu: 0.0.40
codegen_flags: <defaults>
</compile_context>

<pallas_src>
import functools
import numpy as np

import jax
import jax.numpy as jnp
from jax.experimental import pallas as pl
from jax.experimental.pallas import tpu as pltpu


def _round_up(a, m):
    return ((a + m - 1) // m) * m


# ----------------------------------------------------------------------------
# Pallas kernel: fused all-voter matmul + slab softmax + rho mixture + margin
# ----------------------------------------------------------------------------
def _mv_kernel(x_ref, w_ref, b_ref, bd_ref, mix_ref, y_ref,
               score_ref, margin_ref, *, n_classes):
    # (TN, d) f32 -> bf16 feed to the MXU, f32 accumulation.
    x_bf = x_ref[...].astype(jnp.bfloat16)
    logits = jnp.dot(x_bf, w_ref[...],
                     preferred_element_type=jnp.float32) + b_ref[...]  # (TN, 128)

    # slab softmax: pad lanes carry bias -1e30 so they lose the max and exp->0
    m = jnp.max(logits, axis=-1, keepdims=True)                        # (TN, 1)
    e = jnp.exp(logits - m)                                            # (TN, 128)
    # per-voter denominators broadcast back to lanes via block-diagonal ones
    denom = jnp.dot(e, bd_ref[...], preferred_element_type=jnp.float32)
    probs = e / jnp.maximum(denom, 1e-30)                              # (TN, 128)
    # posterior-weighted class mixture (rho baked into mix_ref rows)
    score = jnp.dot(probs, mix_ref[...],
                    preferred_element_type=jnp.float32)                # (TN, C)

    tn = score.shape[0]
    cls = jax.lax.broadcasted_iota(jnp.int32, (tn, n_classes), 1)
    is_y = cls == y_ref[...]                                           # (TN, C)
    true_score = jnp.sum(jnp.where(is_y, score, 0.0), axis=-1, keepdims=True)
    runner_up = jnp.max(jnp.where(is_y, -jnp.inf, score), axis=-1, keepdims=True)

    score_ref[...] = score
    margin_ref[...] = true_score - runner_up


def _pick_tile(n_pad, d, out_w):
    """Largest multiple-of-16 tile that divides n_pad, fits a conservative
    VMEM budget (v7x: 64 MiB physical / 32 MiB scoped default) and leaves
    >= 2 grid steps when possible (v7x megacore)."""
    per_row = (2 * d * 4            # x double buffer (f32)
               + 2 * 128 * 4        # label tile (lane-padded vregs)
               + 2 * 2 * 128 * 4    # score + margin out tiles (lane-padded)
               + 6 * out_w * 4)     # in-kernel f32 temporaries
    resident = (2 * d * out_w * 2   # fused W (assume double-buffered)
                + 2 * out_w * out_w * 4
                + 2 * out_w * 128 * 4
                + 2 * out_w * 4)
    budget = 48 * 1024 * 1024
    cap = max(16, (budget - resident) // max(per_row, 1))
    cap = min(cap, 1024)
    if n_pad >= 32:
        cap = min(cap, n_pad // 2)   # at least two grid steps
    q = n_pad // 16
    best = 1
    dd = 1
    while dd * dd <= q:
        if q % dd == 0:
            for cand in (dd, q // dd):
                if 16 * cand <= cap and cand > best:
                    best = cand
        dd += 1
    return 16 * best
    # TODO(synk): for very large d additionally tile the reduction axis with a
    # VMEM f32 accumulator (pl.when init/finalize, "arbitrary" axis).


def run_majority_vote(x, w_slab, b_slab, bd, mix, y_idx, *, n_classes):
    """x: (n, d) f32, w_slab: (d, out_w) bf16, b_slab: (1, out_w) f32,
    bd: (out_w, out_w) f32 block-diag ones, mix: (out_w, C) f32 (rho folded),
    y_idx: (n,) int32 class indices.  Returns (score (n,C), margin (n,1))."""
    n, d = x.shape
    out_w = w_slab.shape[1]
    C = n_classes

    n_pad = _round_up(max(n, 1), 16)
    tn = _pick_tile(n_pad, d, out_w)
    n_pad = _round_up(n_pad, tn)

    # labels built at padded length on the host (no device pad op)
    y_pad = np.zeros((n_pad, 1), dtype=np.int32)
    y_pad[:n, 0] = np.asarray(y_idx, dtype=np.int32)
    y_pad = jnp.asarray(y_pad)

    if n_pad != n:
        # TODO(synk): handle the ragged last tile with in-kernel masking to
        # avoid this (small, <=tn-1 rows) pad copy of x.
        x = jnp.pad(x, ((0, n_pad - n), (0, 0)))

    grid = n_pad // tn
    vmem_est = (2 * tn * d * 4 + 2 * tn * 128 * 4 + 2 * 2 * tn * 128 * 4
                + 6 * tn * out_w * 4 + 2 * d * out_w * 2
                + 2 * out_w * out_w * 4 + 2 * out_w * 128 * 4 + 2 * out_w * 4)
    vmem_limit = int(min(56 * 2**20, max(16 * 2**20, 2 * vmem_est)))

    cost = pl.CostEstimate(
        flops=2 * n_pad * d * out_w + 2 * n_pad * out_w * out_w
              + 2 * n_pad * out_w * C,
        transcendentals=n_pad * out_w,
        bytes_accessed=(4 * n_pad * d + 4 * n_pad + 2 * d * out_w
                        + 4 * out_w * out_w + 4 * out_w * C + 4 * out_w
                        + 4 * n_pad * (C + 1)))

    kernel = functools.partial(_mv_kernel, n_classes=C)
    score_pad, margin_pad = pl.pallas_call(
        kernel,
        out_shape=(jax.ShapeDtypeStruct((n_pad, C), jnp.float32),
                   jax.ShapeDtypeStruct((n_pad, 1), jnp.float32)),
        grid=(grid,),
        in_specs=[
            pl.BlockSpec((tn, d), lambda i: (i, 0)),          # x tile
            pl.BlockSpec((d, out_w), lambda i: (0, 0)),       # fused W (resident)
            pl.BlockSpec((1, out_w), lambda i: (0, 0)),       # fused bias
            pl.BlockSpec((out_w, out_w), lambda i: (0, 0)),   # block-diag ones
            pl.BlockSpec((out_w, C), lambda i: (0, 0)),       # rho-weighted mixer
            pl.BlockSpec((tn, 1), lambda i: (i, 0)),          # int32 labels tile
        ],
        out_specs=(pl.BlockSpec((tn, C), lambda i: (i, 0)),
                   pl.BlockSpec((tn, 1), lambda i: (i, 0))),
        compiler_params=pltpu.CompilerParams(
            dimension_semantics=("parallel",),
            vmem_limit_bytes=vmem_limit),
        cost_estimate=cost,
    )(x, w_slab, b_slab, bd, mix, y_pad)

    if n_pad != n:
        return score_pad[:n], margin_pad[:n]
    return score_pad, margin_pad


# ----------------------------------------------------------------------------
# Synthetic MajorityVoteDiff (parameters + fused slabs built once at init)
# ----------------------------------------------------------------------------
class MajorityVoteDiff:
    def __init__(self, key, in_dim, n_voters, n_classes):
        k1, k2, k3 = jax.random.split(key, 3)
        self.W = 0.1 * jax.random.normal(k1, (n_voters, in_dim, n_classes),
                                         jnp.float32)
        self.b = 0.01 * jax.random.normal(k2, (n_voters, 1, n_classes),
                                          jnp.float32)
        self.post_ = jax.random.normal(k3, (1, n_voters), jnp.float32)
        self.prior = jnp.full((1, n_voters), 1.0 / n_voters, jnp.float32)
        self.n_classes = n_classes
        self.n_voters = n_voters
        # classes this MV was trained on (float, mirrors torch y_unique)
        self.y_unique = jnp.arange(n_classes, dtype=jnp.float32)
        self.score = None
        self.margin = None
        self.kl = None
        self._build_fused()

    def _build_fused(self):
        """Memoized fused slabs (rebuild only when parameters change)."""
        V, d, C = self.W.shape
        vc = V * C
        out_w = _round_up(vc, 128)
        self.out_w = out_w

        # fused weights: voters side-by-side on lanes, zero-padded, bf16 feed
        w2d = jnp.transpose(self.W, (1, 0, 2)).reshape(d, vc)
        self.w_slab = jnp.pad(w2d, ((0, 0), (0, out_w - vc))).astype(jnp.bfloat16)
        # fused bias: pad lanes get -1e30 so they never win the row max (exp->0)
        b2d = self.b.reshape(1, vc).astype(jnp.float32)
        self.b_slab = jnp.full((1, out_w), -1e30, jnp.float32).at[:, :vc].set(b2d)

        # block-diagonal ones: lanes of the same voter block sum each other
        lane = np.arange(out_w)
        valid = lane < vc
        blk = lane // C
        bd = ((blk[:, None] == blk[None, :]) & valid[:, None] & valid[None, :])
        self.bd = jnp.asarray(bd.astype(np.float32))

        # mixing matrix with rho folded in: mix[v*C+c, c] = rho_v, pad rows 0
        rho = jax.nn.softmax(self.post_, axis=-1)                       # (1, V)
        voter_id = np.where(valid, blk, V).astype(np.int32)             # pad -> V
        cls_id = np.where(valid, lane % C, 0).astype(np.int32)
        rho_ext = jnp.concatenate([rho[0], jnp.zeros((1,), jnp.float32)])
        rho_lane = rho_ext[jnp.asarray(voter_id)]                       # (out_w,)
        onehot_cls = jax.nn.one_hot(jnp.asarray(cls_id), C, dtype=jnp.float32)
        self.mix = onehot_cls * rho_lane[:, None]                       # (out_w, C)

        # posterior softmax + KL hoisted out of the hot path (memoized)
        self.rho = rho
        self._kl = jnp.sum(rho * (jnp.log(rho) - jnp.log(self.prior)))

    def __call__(self, batch):
        x = batch['x'].astype(jnp.float32)            # (n, d) already flattened
        y = np.asarray(batch['y'], dtype=np.float32)  # (n,) labels (host bookkeeping)
        yu = np.asarray(self.y_unique, dtype=np.float32)
        # TODO(synk): labels absent from y_unique (or a resync that grows it past
        # the voter output width frozen at init) are not representable here;
        # they are mapped onto the nearest y_unique index via searchsorted.
        y_idx = np.searchsorted(yu, y).astype(np.int32)
        y_idx = np.clip(y_idx, 0, self.n_classes - 1)
        score, margin = run_majority_vote(
            x, self.w_slab, self.b_slab, self.bd, self.mix, y_idx,
            n_classes=self.n_classes)
        self.score = score
        self.margin = margin
        return score

    def KL(self):
        self.kl = self._kl


# ----------------------------------------------------------------------------
# MultipleMajorityVoteDiff: faithful port of the reference forward / KL logic
# ----------------------------------------------------------------------------
class MultipleMajorityVoteDiff:
    def __init__(self, mv_diff_list):
        self.mv_diff_list = mv_diff_list
        self.post_ = jnp.concatenate([mv.post_.reshape(-1) for mv in mv_diff_list])
        self.prior = jnp.concatenate([mv.prior.reshape(-1) for mv in mv_diff_list])
        self.y_unique = jnp.asarray(np.array([], dtype=np.float32))

    def forward(self, batch):
        # TODO(synk): all MVs could be fused into ONE grouped pallas_call
        # (PrefetchScalarGridSpec with per-group weight-slab indices) to
        # amortize launch overhead for many tiny MVs.
        x_size = 0
        for i in range(1, len(self.mv_diff_list) + 1):
            x_size += batch[f'x_{i}'].shape[0]
        self.score = None
        margins = []                       # collected on device, no per-MV sync
        y_unique_size = None
        self.kl = []
        i = 0
        x_size_tmp = 0
        while i < len(self.mv_diff_list):
            i_ = len(self.mv_diff_list) - i          # reversed-access quirk kept
            mv = self.mv_diff_list[i]
            x_i = batch[f'x_{i_}']
            batch_ = {'x': x_i.reshape(x_i.shape[0], -1), 'y': batch[f'y_{i_}']}
            mv(batch_)
            # y_unique union / sort (host-side bookkeeping, data dependent)
            yu = np.unique(np.concatenate([np.asarray(self.y_unique),
                                           np.asarray(mv.y_unique)]))
            self.y_unique = jnp.asarray(np.sort(yu).astype(np.float32))
            if y_unique_size is None:
                y_unique_size = len(self.y_unique)
            if (len(self.y_unique) != y_unique_size
                    or len(self.y_unique) != len(mv.y_unique)):
                for j in range(len(self.mv_diff_list)):
                    self.mv_diff_list[j].y_unique = self.y_unique
                y_unique_size = len(self.y_unique)
                self.score = None
                margins = []
                i = 0
                x_size_tmp = 0
            else:
                margins.append(mv.margin)
                if self.score is None:
                    self.score = mv.score
                else:
                    self.score = jnp.concatenate((self.score, mv.score), axis=0)
                x_size_tmp += batch_['x'].shape[0]
                i += 1
        self.margin = jnp.concatenate(margins, axis=0)   # (x_size, 1)
        pred = jnp.argmax(self.score, axis=1, keepdims=True)
        self.pred = self.y_unique[pred]
        self.KL()
        return self.pred

    def KL(self):
        kls = []
        for mv in self.mv_diff_list:
            mv.KL()
            kls.append(mv.kl)
        self.kl = jnp.mean(jnp.stack(kls))


# ----------------------------------------------------------------------------
if __name__ == "__main__":
    key = jax.random.PRNGKey(0)
    num_mvs = 2
    n_classes = 3
    n_per_mv = 8
    C_in, H, W_sp = 4, 4, 4
    d = C_in * H * W_sp
    n_voters = [4, 6]

    keys = jax.random.split(key, 2 * num_mvs)
    mv_list = [MajorityVoteDiff(keys[i], d, n_voters[i], n_classes)
               for i in range(num_mvs)]
    model = MultipleMajorityVoteDiff(mv_list)

    batch = {}
    for i in range(1, num_mvs + 1):
        kx = keys[num_mvs + i - 1]
        # layout: x_i is NCHW, matching the PyTorch module's input convention
        batch[f'x_{i}'] = jax.random.normal(kx, (n_per_mv, C_in, H, W_sp),
                                            jnp.float32)
        batch[f'y_{i}'] = jnp.asarray(
            (np.arange(n_per_mv) % n_classes).astype(np.float32))

    pred = model.forward(batch)

    jax.block_until_ready(model.score)
    jax.block_until_ready(model.margin)
    jax.block_until_ready(model.pred)
    jax.block_until_ready(model.kl)
    print("KERNEL_OK")
</pallas_src>

<mosaic_0001>
module attributes {stable_mosaic.version = 11 : i64} {
  func.func @_mv_kernel(%arg0: i32, %arg1: memref<16x64xf32, #tpu.memory_space<vmem>>, %arg2: memref<64x128xbf16, #tpu.memory_space<vmem>>, %arg3: memref<1x128xf32, #tpu.memory_space<vmem>>, %arg4: memref<128x128xf32, #tpu.memory_space<vmem>>, %arg5: memref<128x3xf32, #tpu.memory_space<vmem>>, %arg6: memref<16x1xi32, #tpu.memory_space<vmem>>, %arg7: memref<16x3xf32, #tpu.memory_space<vmem>>, %arg8: memref<16x1xf32, #tpu.memory_space<vmem>>) attributes {dimension_semantics = [#tpu.dimension_semantics<parallel>], iteration_bounds = array<i64: 1>, scalar_prefetch = 0 : i64, scratch_operands = 0 : i64, tpu.core_type = #tpu.core_type<tc>, window_params = [{transform_indices = @transform_0, window_bounds = array<i64: 16, 64>}, {pipeline_mode = #tpu.pipeline_mode<synchronous>, transform_indices = @transform_1, window_bounds = array<i64: 64, 128>}, {pipeline_mode = #tpu.pipeline_mode<synchronous>, transform_indices = @transform_2, window_bounds = array<i64: 1, 128>}, {pipeline_mode = #tpu.pipeline_mode<synchronous>, transform_indices = @transform_3, window_bounds = array<i64: 128, 128>}, {pipeline_mode = #tpu.pipeline_mode<synchronous>, transform_indices = @transform_4, window_bounds = array<i64: 128, 3>}, {transform_indices = @transform_5, window_bounds = array<i64: 16, 1>}, {transform_indices = @transform_6, window_bounds = array<i64: 16, 3>}, {transform_indices = @transform_7, window_bounds = array<i64: 16, 1>}]} {
    %c0 = arith.constant 0 : index
    %c0_0 = arith.constant 0 : index
    %0 = vector.load %arg1[%c0, %c0_0] : memref<16x64xf32, #tpu.memory_space<vmem>>, vector<16x64xf32>
    %1 = arith.truncf %0 : vector<16x64xf32> to vector<16x64xbf16>
    %c0_1 = arith.constant 0 : index
    %c0_2 = arith.constant 0 : index
    %2 = vector.load %arg2[%c0_1, %c0_2] : memref<64x128xbf16, #tpu.memory_space<vmem>>, vector<64x128xbf16>
    %cst = arith.constant dense<0.000000e+00> : vector<16x128xf32>
    %3 = tpu.matmul %1, %2, %cst {dimension_numbers = #tpu.dot_dimension_numbers<[1], [0], [0], [1], [0, 0, 1, 1], [], []>} : vector<16x64xbf16>, vector<64x128xbf16>, vector<16x128xf32> -> vector<16x128xf32>
    %c0_3 = arith.constant 0 : index
    %c0_4 = arith.constant 0 : index
    %4 = vector.load %arg3[%c0_3, %c0_4] : memref<1x128xf32, #tpu.memory_space<vmem>>, vector<1x128xf32>
    %5 = vector.broadcast %4 : vector<1x128xf32> to vector<16x128xf32>
    %6 = arith.addf %3, %5 : vector<16x128xf32>
    %cst_5 = arith.constant dense<0xFF800000> : vector<16xf32>
    %7 = vector.multi_reduction <maximumf>, %6, %cst_5 [1] : vector<16x128xf32> to vector<16xf32>
    %8 = vector.shape_cast %7 : vector<16xf32> to vector<16x1xf32>
    %9 = vector.broadcast %8 : vector<16x1xf32> to vector<16x128xf32>
    %10 = arith.subf %6, %9 : vector<16x128xf32>
    %11 = math.exp %10 : vector<16x128xf32>
    %c0_6 = arith.constant 0 : index
    %c0_7 = arith.constant 0 : index
    %12 = vector.load %arg4[%c0_6, %c0_7] : memref<128x128xf32, #tpu.memory_space<vmem>>, vector<128x128xf32>
    %cst_8 = arith.constant dense<0.000000e+00> : vector<16x128xf32>
    %13 = tpu.matmul %11, %12, %cst_8 {dimension_numbers = #tpu.dot_dimension_numbers<[1], [0], [0], [1], [0, 0, 1, 1], [], []>} : vector<16x128xf32>, vector<128x128xf32>, vector<16x128xf32> -> vector<16x128xf32>
    %cst_9 = arith.constant 1.000000e-30 : f32
    %14 = vector.broadcast %cst_9 : f32 to vector<16x128xf32>
    %15 = arith.maximumf %13, %14 : vector<16x128xf32>
    %16 = arith.divf %11, %15 : vector<16x128xf32>
    %c0_10 = arith.constant 0 : index
    %c0_11 = arith.constant 0 : index
    %17 = vector.load %arg5[%c0_10, %c0_11] : memref<128x3xf32, #tpu.memory_space<vmem>>, vector<128x3xf32>
    %cst_12 = arith.constant dense<0.000000e+00> : vector<16x3xf32>
    %18 = tpu.matmul %16, %17, %cst_12 {dimension_numbers = #tpu.dot_dimension_numbers<[1], [0], [0], [1], [0, 0, 1, 1], [], []>} : vector<16x128xf32>, vector<128x3xf32>, vector<16x3xf32> -> vector<16x3xf32>
    %19 = tpu.iota {dimensions = array<i32: 1>} : vector<16x3xi32>
    %c0_13 = arith.constant 0 : index
    %c0_14 = arith.constant 0 : index
    %20 = vector.load %arg6[%c0_13, %c0_14] : memref<16x1xi32, #tpu.memory_space<vmem>>, vector<16x1xi32>
    %21 = vector.broadcast %20 : vector<16x1xi32> to vector<16x3xi32>
    %22 = arith.cmpi eq, %19, %21 : vector<16x3xi32>
    %cst_15 = arith.constant 0.000000e+00 : f32
    %23 = vector.broadcast %cst_15 : f32 to vector<16x3xf32>
    %24 = arith.select %22, %18, %23 : vector<16x3xi1>, vector<16x3xf32>
    %cst_16 = arith.constant dense<0.000000e+00> : vector<16xf32>
    %25 = vector.multi_reduction <add>, %24, %cst_16 [1] : vector<16x3xf32> to vector<16xf32>
    %26 = vector.shape_cast %25 : vector<16xf32> to vector<16x1xf32>
    %cst_17 = arith.constant 0xFF800000 : f32
    %27 = vector.broadcast %cst_17 : f32 to vector<16x3xf32>
    %28 = arith.select %22, %27, %18 : vector<16x3xi1>, vector<16x3xf32>
    %cst_18 = arith.constant dense<0xFF800000> : vector<16xf32>
    %29 = vector.multi_reduction <maximumf>, %28, %cst_18 [1] : vector<16x3xf32> to vector<16xf32>
    %30 = vector.shape_cast %29 : vector<16xf32> to vector<16x1xf32>
    %c0_19 = arith.constant 0 : index
    %c0_20 = arith.constant 0 : index
    %31 = vector.load %arg7[%c0_19, %c0_20] : memref<16x3xf32, #tpu.memory_space<vmem>>, vector<16x3xf32>
    tpu.vector_store %arg7[%c0_19, %c0_20], %18 {strides = array<i32>} : memref<16x3xf32, #tpu.memory_space<vmem>>, vector<16x3xf32>,
    %32 = arith.subf %26, %30 : vector<16x1xf32>
    %c0_21 = arith.constant 0 : index
    %c0_22 = arith.constant 0 : index
    %33 = vector.load %arg8[%c0_21, %c0_22] : memref<16x1xf32, #tpu.memory_space<vmem>>, vector<16x1xf32>
    tpu.vector_store %arg8[%c0_21, %c0_22], %32 {strides = array<i32>} : memref<16x1xf32, #tpu.memory_space<vmem>>, vector<16x1xf32>,
    return
  }
  func.func @transform_0(%arg0: i32) -> (i32, i32) {
    %c0_i32 = arith.constant 0 : i32
    %c0_i32_0 = arith.constant 0 : i32
    return %arg0, %c0_i32 : i32, i32
  }
  func.func @transform_1(%arg0: i32) -> (i32, i32) {
    %c0_i32 = arith.constant 0 : i32
    %c0_i32_0 = arith.constant 0 : i32
    %c0_i32_1 = arith.constant 0 : i32
    return %c0_i32, %c0_i32_0 : i32, i32
  }
  func.func @transform_2(%arg0: i32) -> (i32, i32) {
    %c0_i32 = arith.constant 0 : i32
    %c0_i32_0 = arith.constant 0 : i32
    %c0_i32_1 = arith.constant 0 : i32
    return %c0_i32, %c0_i32_0 : i32, i32
  }
  func.func @transform_3(%arg0: i32) -> (i32, i32) {
    %c0_i32 = arith.constant 0 : i32
    %c0_i32_0 = arith.constant 0 : i32
    %c0_i32_1 = arith.constant 0 : i32
    return %c0_i32, %c0_i32_0 : i32, i32
  }
  func.func @transform_4(%arg0: i32) -> (i32, i32) {
    %c0_i32 = arith.constant 0 : i32
    %c0_i32_0 = arith.constant 0 : i32
    %c0_i32_1 = arith.constant 0 : i32
    return %c0_i32, %c0_i32_0 : i32, i32
  }
  func.func @transform_5(%arg0: i32) -> (i32, i32) {
    %c0_i32 = arith.constant 0 : i32
    %c0_i32_0 = arith.constant 0 : i32
    return %arg0, %c0_i32 : i32, i32
  }
  func.func @transform_6(%arg0: i32) -> (i32, i32) {
    %c0_i32 = arith.constant 0 : i32
    %c0_i32_0 = arith.constant 0 : i32
    return %arg0, %c0_i32 : i32, i32
  }
  func.func @transform_7(%arg0: i32) -> (i32, i32) {
    %c0_i32 = arith.constant 0 : i32
    %c0_i32_0 = arith.constant 0 : i32
    return %arg0, %c0_i32 : i32, i32
  }
}

</mosaic_0001>

<bundles_post_ra>
// kernel: tpu_custom_call.1
= control target key start
LH: loop header
LB: loop body
LE: loop exit
PB: predicated region body
PF: predicated region fallthrough
CT: control target
= control target key end

     0   :  { %13 = vsyncpa [#allocation3], 0  ;;  %s342_s27 = smov [#allocation2]   ;;  %s343_s29 = smov 64   ;;  %s522_s0 = inlined_call_operand.vmem [shape: f32[16,64], index: 0, kind: input, shape index: {}]   ;;  %s523_s1 = inlined_call_operand.hbm [shape: bf16[64,128], index: 1, kind: input, shape index: {}]   ;;  %s524_s2 = inlined_call_operand.vmem [shape: f32[1,128], index: 2, kind: input, shape index: {}]   ;;  %s525_s3 = inlined_call_operand.vmem [shape: f32[128,128], index: 3, kind: input, shape index: {}]   ;;  %s526_s4 = inlined_call_operand.vmem [shape: f32[128,3], index: 4, kind: input, shape index: {}]   ;;  %s527_s5 = inlined_call_operand.vmem [shape: s32[16,1], index: 5, kind: input, shape index: {}]   ;;  %s528_s6 = inlined_call_operand.vmem [shape: f32[16,3], index: 6, kind: output, shape index: {0}]   ;;  %s529_s7 = inlined_call_operand.vmem [shape: f32[16,1], index: 7, kind: output, shape index: {1}]  }
   0x1   :  { %s20_s26 = sshll.u32 %s523_s1, 4  ;;  %s22_s28 = sshll.u32 %s342_s27, 4  ;;  %s21_s26 = int_to_ptr.hbm [resolvable:$true] %s20_s26  ;;  %s23_s28 = int_to_ptr.vmem [resolvable:$true] %s22_s28 }
   0x2   :  { %s344_s30 = smov 4  }
   0x3   :  { %28 = dma.hbm_to_vmem [thread:$0]  %s21_s26, 512, %s23_s28, [#allocation3], %s343_s29, %s343_s29, %s344_s30  }
   0x4   :  { %340 = dma.done.wait [#allocation3], 512  }
   0x5   :  { %341 = vsyncadd [#allocation3], 4294966784  ;;  %v284_v0 = vld [vmem:[#allocation2 + $0x18] sm:$0xff]  ;;  %v283_v1 = vld [vmem:[#allocation2 + $0x10] sm:$0xff]  ;;  %vm81_vm0 = vcmask 523264   ;;  %v345_v53 = vmov 0  }
   0x6   :  { %89 = vmatpush.bf16.msra.mxu0 %v284_v0  ;;  %v282_v2 = vld [vmem:[#allocation2 + $0x8] sm:$0xff]  ;;  %v281_v3 = vld [vmem:[#allocation2] sm:$0xff]  ;;  %v124_v7 = vld [vmem:[%s525_s3 + $0x78] sm:$0xff]  ;;  %305 = vset.pattern.permute.xlu1 %v345_v53  ;;  %vm233_vm10 = vcmask 23552   ;;  %vm252_vm12 = vcmask 7168  }
   0x7   :  { %v42_v4 = vld [vmem:[%s522_s0] sm:$0xff]  ;;  %v43_v5 = vld [vmem:[%s522_s0 + $0x8] sm:$0xff]  ;;  %v123_v8 = vld [vmem:[%s525_s3 + $0x70] sm:$0xff]  ;;  %125 = vmatpush.msra.mxu1 %v124_v7  ;;  %285 = vmatpush.msra.mxu3 %v124_v7 }
   0x8   :  { %v44_v6 = vpack.c.bf16 %v43_v5, %v42_v4  ;;  %v122_v9 = vld [vmem:[%s525_s3 + $0x68] sm:$0xff]  ;;  %v121_v10 = vld [vmem:[%s525_s3 + $0x60] sm:$0xff]  ;;  %v120_v11 = vld [vmem:[%s525_s3 + $0x58] sm:$0xff]  ;;  %306 = vset.pattern.permute.xlu0 %v345_v53 }
   0x9   :  { %126 = vmatpush.msra.mxu1 %v123_v8  ;;  %286 = vmatpush.msra.mxu3 %v123_v8  ;;  %v119_v12 = vld [vmem:[%s525_s3 + $0x50] sm:$0xff]  ;;  %v118_v13 = vld [vmem:[%s525_s3 + $0x48] sm:$0xff]  ;;  %v117_v14 = vld [vmem:[%s525_s3 + $0x40] sm:$0xff] }
   0xa   :  { %90 = vmatpush.bf16.msra.mxu0 %v283_v1  ;;  %v116_v15 = vld [vmem:[%s525_s3 + $0x38] sm:$0xff]  ;;  %v115_v16 = vld [vmem:[%s525_s3 + $0x30] sm:$0xff]  ;;  %v307_v17 = vld [vmem:[%s524_s2] ss:$0 sm:$0xff] }
   0xb   :  { %127 = vmatpush.msra.mxu1 %v122_v9  ;;  %287 = vmatpush.msra.mxu3 %v122_v9  ;;  %v114_v22 = vld [vmem:[%s525_s3 + $0x28] sm:$0xff]  ;;  %v113_v23 = vld [vmem:[%s525_s3 + $0x20] sm:$0xff]  ;;  %v112_v24 = vld [vmem:[%s525_s3 + $0x18] sm:$0xff] }
   0xc   :  { %v111_v25 = vld [vmem:[%s525_s3 + $0x10] sm:$0xff]  ;;  %v110_v26 = vld [vmem:[%s525_s3 + $0x8] sm:$0xff]  ;;  %v109_v27 = vld [vmem:[%s525_s3] sm:$0xff] }
   0xd   :  { %128 = vmatpush.msra.mxu1 %v121_v10  ;;  %288 = vmatpush.msra.mxu3 %v121_v10  ;;  %v195_v28 = vld [vmem:[%s526_s4 + $0x78] sm:$0xff]  ;;  %v194_v29 = vld [vmem:[%s526_s4 + $0x70] sm:$0xff]  ;;  %v193_v30 = vld [vmem:[%s526_s4 + $0x68] sm:$0xff] }
   0xe   :  { %91 = vmatpush.bf16.msra.mxu0 %v282_v2  ;;  %196 = vmatpush.msra.mxu2 %v195_v28  ;;  %v192_v31 = vld [vmem:[%s526_s4 + $0x60] sm:$0xff]  ;;  %v191_v32 = vld [vmem:[%s526_s4 + $0x58] sm:$0xff]  ;;  %v190_v41 = vld [vmem:[%s526_s4 + $0x50] sm:$0xff] }
   0xf   :  { %129 = vmatpush.msra.mxu1 %v120_v11  ;;  %289 = vmatpush.msra.mxu3 %v120_v11  ;;  %v189_v42 = vld [vmem:[%s526_s4 + $0x48] sm:$0xff]  ;;  %v188_v43 = vld [vmem:[%s526_s4 + $0x40] sm:$0xff]  ;;  %v187_v44 = vld [vmem:[%s526_s4 + $0x38] sm:$0xff] }
  0x10   :  { %197 = vmatpush.msra.mxu2 %v194_v29  ;;  %v186_v45 = vld [vmem:[%s526_s4 + $0x30] sm:$0xff]  ;;  %v185_v46 = vld [vmem:[%s526_s4 + $0x28] sm:$0xff]  ;;  %v184_v47 = vld [vmem:[%s526_s4 + $0x20] sm:$0xff] }
  0x11   :  { %130 = vmatpush.msra.mxu1 %v119_v12  ;;  %290 = vmatpush.msra.mxu3 %v119_v12  ;;  %v183_v48 = vld [vmem:[%s526_s4 + $0x18] sm:$0xff]  ;;  %v182_v49 = vld [vmem:[%s526_s4 + $0x10] sm:$0xff]  ;;  %v181_v50 = vld [vmem:[%s526_s4 + $0x8] sm:$0xff] }
  0x12   :  { %92 = vmatpush.bf16.msra.mxu0 %v281_v3  ;;  %198 = vmatpush.msra.mxu2 %v193_v30  ;;  %v180_v51 = vld [vmem:[%s526_s4] sm:$0xff]  ;;  %v222_v56 = vld [vmem:[%s527_s5 + $0x8] sm:$0xff] }
  0x13   :  { %131 = vmatpush.msra.mxu1 %v118_v13  ;;  %291 = vmatpush.msra.mxu3 %v118_v13  ;;  %v221_v52 = vld [vmem:[%s527_s5] sm:$0xff] }
  0x14   :  { %199 = vmatpush.msra.mxu2 %v192_v31  ;;  %224 = vperm.xlu1 %305, %v221_v52  }
  0x15   :  { %280 = vmatmul.msk.bf16.vlgmr.msra.gmra.mxu0 %vm81_vm0, %v44_v6  ;;  %132 = vmatpush.msra.mxu1 %v117_v14 }
  0x16   :  { %292 = vmatpush.msra.mxu3 %v117_v14  ;;  %200 = vmatpush.msra.mxu2 %v191_v32 }
  0x17   :  { %133 = vmatpush.msra.mxu1 %v116_v15 }
  0x18   :  { %293 = vmatpush.msra.mxu3 %v116_v15  ;;  %201 = vmatpush.msra.mxu2 %v190_v41 }
  0x19   :  { %134 = vmatpush.msra.mxu1 %v115_v16 }
  0x1a   :  { %294 = vmatpush.msra.mxu3 %v115_v16  ;;  %202 = vmatpush.msra.mxu2 %v189_v42 }
  0x1b   :  { %135 = vmatpush.msra.mxu1 %v114_v22 }
  0x1c   :  { %295 = vmatpush.msra.mxu3 %v114_v22  ;;  %203 = vmatpush.msra.mxu2 %v188_v43 }
  0x1d   :  { %136 = vmatpush.msra.mxu1 %v113_v23  ;;  %227 = vperm.xlu1 %305, %v222_v56  }
  0x1e   :  { %296 = vmatpush.msra.mxu3 %v113_v23  ;;  %204 = vmatpush.msra.mxu2 %v187_v44 }
  0x1f   :  { %137 = vmatpush.msra.mxu1 %v112_v24 }
  0x20   :  { %297 = vmatpush.msra.mxu3 %v112_v24  ;;  %205 = vmatpush.msra.mxu2 %v186_v45 }
  0x21   :  { %138 = vmatpush.msra.mxu1 %v111_v25 }
  0x22   :  { %298 = vmatpush.msra.mxu3 %v111_v25  ;;  %206 = vmatpush.msra.mxu2 %v185_v46 }
  0x23   :  { %139 = vmatpush.msra.mxu1 %v110_v26 }
  0x24   :  { %299 = vmatpush.msra.mxu3 %v110_v26  ;;  %207 = vmatpush.msra.mxu2 %v184_v47 }
  0x25   :  { %140 = vmatpush.msra.mxu1 %v109_v27 }
  0x26   :  { %300 = vmatpush.msra.mxu3 %v109_v27  ;;  %208 = vmatpush.msra.mxu2 %v183_v48 }
  0x28   :  { %209 = vmatpush.msra.mxu2 %v182_v49 }
  0x2a   :  { %210 = vmatpush.msra.mxu2 %v181_v50 }
  0x2c   :  { %211 = vmatpush.msra.mxu2 %v180_v51 }
  0x92   :  { %v94_v18 = vpop.f32.mrf.mxu0 }
  0x93   :  { %v95_v19 = vadd.f32 %v307_v17, %v94_v18 }
  0x95   :  { %99 = vmax.xlane.f32.xlu0 %v95_v19 }
  0x9a   :  { %v96_v20 = vpop.f32.mrf.mxu0 }
  0x9b   :  { %v97_v21 = vadd.f32 %v307_v17, %v96_v20  ;;  %v219_v17 = vlaneseq }
  0x9d   :  { %101 = vmax.xlane.f32.xlu0 %v97_v21  ;;  %v220_v18 = vand.u32 127, %v219_v17 }
 0x108   :  { %v100_v33 = vpop.xlane.xlu0 %99 }
 0x109   :  { %v103_v34 = vsub.f32 %v95_v19, %v100_v33  ;;  %v225_v19 = vpop.permute.xlu1 %224 }
 0x10a   :  { %vm229_vm9 = vcmp.eq.s32.totalorder %v220_v18, %v225_v19 }
 0x10b   :  { %v105_v35 = vmul.f32 1.442695, %v103_v34 }
 0x10d   :  { %308 = vpow2.f32 %v105_v35 }
 0x110   :  { %v102_v36 = vpop.xlane.xlu0 %101 }
 0x111   :  { %v104_v37 = vsub.f32 %v97_v21, %v102_v36  ;;  %v228_v25 = vpop.permute.xlu1 %227 }
 0x112   :  { %vm230_vm11 = vcmp.eq.s32.totalorder %v220_v18, %v228_v25 }
 0x113   :  { %v309_v38 = vpop.eup %308  ;;  %v107_v39 = vmul.f32 1.442695, %v104_v37 }
 0x114   :  { %141 = vmatmul.f32.vlgmr.msra.gmra.mxu1 %v309_v38 }
 0x115   :  { %310 = vpow2.f32 %v107_v39 }
 0x11b   :  { %v461_v40 = vpop.eup %310 }
 0x11c   :  { %144 = vmatmul.f32.vlgmr.msra.gmra.mxu3 %v461_v40 }
 0x191   :  { %v142_v54 = vpop.f32.mrf.mxu1 }
 0x192   :  { %v148_v55 = vmax.f32 %v142_v54, 1e-30 }
 0x194   :  { %312 = vrcp.f32 %v148_v55  ;;  %v161_v60 = vand.u32 2147483648, %v148_v55  ;;  %v159_v63 = vand.u32 2147483647, %v148_v55  ;;  %vm155_vm2 = vweird.f32 %v148_v55 }
 0x196   :  { %v162_v2 = vor.u32 1.1754944e-38, %v161_v60  ;;  %vm160_vm4 = vcmp.eq.f32.partialorder %v159_v63, 8.507059e+37 }
 0x19a   :  { %v313_v57 = vpop.eup %312 }
 0x19b   :  { %v151_v58 = vmul.f32 %v313_v57, %v148_v55  ;;  %vm156_vm1 = vweird.f32 %v313_v57 }
 0x19c   :  { %vm157_vm3 = vmor %vm155_vm2, %vm156_vm1 }
 0x19d   :  { %v152_v59 = vsub.f32 1.0, %v151_v58 }
 0x19f   :  { %v145_v61 = vpop.f32.mrf.mxu3  ;;  %v153_v62 = vmul.f32 %v313_v57, %v152_v59 }
 0x1a0   :  { %v149_v0 = vmax.f32 %v145_v61, 1e-30 }
 0x1a1   :  { %v154_v1 = vadd.f32 %v313_v57, %v153_v62 }
 0x1a2   :  { %314 = vrcp.f32 %v149_v0  ;;  %v176_v9 = vand.u32 2147483648, %v149_v0  ;;  %v174_v11 = vand.u32 2147483647, %v149_v0  ;;  %vm170_vm6 = vweird.f32 %v149_v0 }
 0x1a3   :  { %v158_v3 = vsel %vm157_vm3, %v313_v57, %v154_v1 }
 0x1a4   :  { %v163_v4 = vsel %vm160_vm4, %v162_v2, %v158_v3  ;;  %v177_v13 = vor.u32 1.1754944e-38, %v176_v9  ;;  %vm175_vm8 = vcmp.eq.f32.partialorder %v174_v11, 8.507059e+37 }
 0x1a5   :  { %v164_v5 = vmul.f32 %v309_v38, %v163_v4 }
 0x1a7   :  { %212 = vmatmul.f32.vlgmr.msra.gmra.mxu2 %v164_v5 }
 0x1a8   :  { %v315_v6 = vpop.eup %314 }
 0x1a9   :  { %v166_v7 = vmul.f32 %v315_v6, %v149_v0  ;;  %vm171_vm5 = vweird.f32 %v315_v6 }
 0x1aa   :  { %vm172_vm7 = vmor %vm170_vm6, %vm171_vm5 }
 0x1ab   :  { %v167_v8 = vsub.f32 1.0, %v166_v7 }
 0x1ad   :  { %v168_v10 = vmul.f32 %v315_v6, %v167_v8 }
 0x1af   :  { %v169_v12 = vadd.f32 %v315_v6, %v168_v10 }
 0x1b1   :  { %v173_v14 = vsel %vm172_vm7, %v315_v6, %v169_v12 }
 0x1b2   :  { %v178_v15 = vsel %vm175_vm8, %v177_v13, %v173_v14 }
 0x1b3   :  { %v179_v16 = vmul.f32 %v461_v40, %v178_v15 }
 0x1b5   :  { %215 = vmatmul.f32.gmra.mxu2 %v179_v16 }
 0x22a   :  { %v213_v20 = vpop.f32.mrf.mxu2 }
 0x22b   :  { %248 = vst.msk [vmem:[%s528_s6] sm:$0xff] %vm233_vm10, %v213_v20  ;;  %v240_v21 = vsel %vm229_vm9, -inf, %v213_v20  ;;  %v231_v22 = vsel %vm229_vm9, %v213_v20, 0.0 }
 0x22c   :  { %v242_v23 = vsel %vm233_vm10, %v240_v21, -inf  ;;  %v234_v24 = vsel %vm233_vm10, %v231_v22, 0.0 }
 0x22d   :  { %243 = vmax.xlane.f32.xlu0 %v242_v23  ;;  %235 = vadd.xlane.f32.xlu2 %v234_v24 }
 0x238   :  { %v216_v26 = vpop.f32.mrf.mxu2 }
 0x239   :  { %249 = vst.msk [vmem:[%s528_s6 + $0x8] sm:$0xff] %vm233_vm10, %v216_v26  ;;  %v241_v27 = vsel %vm230_vm11, -inf, %v216_v26  ;;  %v232_v28 = vsel %vm230_vm11, %v216_v26, 0.0 }
 0x23a   :  { %v245_v29 = vsel %vm233_vm10, %v241_v27, -inf  ;;  %v237_v30 = vsel %vm233_vm10, %v232_v28, 0.0 }
 0x23b   :  { %246 = vmax.xlane.f32.xlu1 %v245_v29  ;;  %238 = vadd.xlane.f32.xlu2 %v237_v30 }
 0x2a0   :  { %v236_v31 = vpop.xlane.xlu2 %235  ;;  %v244_v32 = vpop.xlane.xlu0 %243 }
 0x2a1   :  { %v250_v33 = vsub.f32 %v236_v31, %v244_v32 }
 0x2a3   :  { %253 = vst.msk [vmem:[%s529_s7] sm:$0xff] %vm252_vm12, %v250_v33 }
 0x2ae   :  { %v247_v34 = vpop.xlane.xlu1 %246  ;;  %v239_v35 = vpop.xlane.xlu2 %238 }
 0x2af   :  { %v251_v36 = vsub.f32 %v239_v35, %v247_v34 }
 0x2b1   :  { %254 = vst.msk [vmem:[%s529_s7 + $0x8] sm:$0xff] %vm252_vm12, %v251_v36 }
 0x2b2   :  { %263 = vsyncpa [#allocation3], 1 }

</bundles_post_ra>
